<compile_context>
chip_gen: v7x
topology: tpu7x:2x2x1
jax: 0.10.0
libtpu: 0.0.40
codegen_flags: <defaults>
</compile_context>

<pallas_src>
import functools

import jax
import jax.numpy as jnp
from jax.experimental import pallas as pl
from jax.experimental.pallas import tpu as pltpu


def _make_policy_kernel(F, training):
    """Kernel factory: `training` is static, so eval mode has no sampling path."""

    def kernel(x_ref, p_ref, out_ref):
        # Parameter slab (F+3, H):
        #   rows [0, F)   : w1   (F, H)
        #   row  F        : b1   (1, H)
        #   row  F+1      : w2d = w2[1] - w2[0]   (1, H)
        #   row  F+2      : [b2d, 0, ...]  with b2d = b2[1] - b2[0]
        w1 = p_ref[0:F, :]                         # (F, H)
        b1 = p_ref[F:F + 1, :]                     # (1, H)
        w2d = p_ref[F + 1:F + 2, :]                # (1, H)
        b2d = p_ref[F + 2:F + 3, 0:1]              # (1, 1)

        x = x_ref[:, 0:F]                          # (B, F)

        # Linear 1 (MXU) + ReLU
        h = jnp.dot(x, w1, preferred_element_type=jnp.float32) + b1
        h = jnp.maximum(h, 0.0)                    # (B, H)

        # Head: logit difference d = l1 - l0 (single VPU mul + lane reduce).
        d = jnp.sum(h * w2d, axis=-1, keepdims=True) + b2d     # (B, 1)

        # Stable 2-class softmax == sigmoid on d; one exp + one log1p.
        e = jnp.exp(-jnp.abs(d))                   # exp(-|d|) in (0, 1]
        log1pe = jnp.log1p(e)
        logp1 = -(jnp.maximum(-d, 0.0) + log1pe)   # log sigmoid(d)
        logp0 = -(jnp.maximum(d, 0.0) + log1pe)    # log sigmoid(-d)
        inv = 1.0 / (1.0 + e)
        p1 = jnp.where(d >= 0.0, inv, e * inv)     # exact sigmoid(d)
        p0 = 1.0 - p1                              # rows sum to 1 exactly

        if training:
            # Inverse-CDF categorical sample: class 1 iff u >= P(class 0).
            u = x_ref[:, F:F + 1]                  # uniform column packed with x
            sampled = (u >= p0).astype(jnp.float32)
        else:
            # Greedy: argmax over 2 logits (ties -> class 0, like torch.argmax).
            sampled = (d > 0.0).astype(jnp.float32)

        logprob = jnp.where(sampled > 0.5, logp1, logp0)

        # Single lane-packed writeback: [p0, p1, logprob, sampled].
        out_ref[...] = jnp.concatenate([p0, p1, logprob, sampled], axis=1)

    return kernel


@functools.partial(jax.jit, static_argnames=("training",))
def net_forward(truth, params, key, training=True):
    """Reproduces Net.forward: returns (dist.probs, sampled, logprobs)."""
    w1, b1, w2, b2 = params
    B, F = truth.shape
    H = w1.shape[1]

    # Pack all parameters into one VMEM slab (single DMA).
    w2d = w2[1:2, :] - w2[0:1, :]                                  # (1, H)
    b2d_row = jnp.zeros((1, H), jnp.float32).at[0, 0].set(b2[0, 1] - b2[0, 0])
    param_slab = jnp.concatenate([w1, b1, w2d, b2d_row], axis=0)   # (F+3, H)

    if training:
        u = jax.random.uniform(key, (B, 1), dtype=jnp.float32)
        x_in = jnp.concatenate([truth, u], axis=1)                 # (B, F+1)
    else:
        x_in = truth                                               # (B, F)

    vmem = pl.BlockSpec(memory_space=pltpu.MemorySpace.VMEM)

    packed = pl.pallas_call(
        _make_policy_kernel(F, training),
        out_shape=jax.ShapeDtypeStruct((B, 4), jnp.float32),
        in_specs=[vmem, vmem],
        out_specs=vmem,
    )(x_in, param_slab)

    probs = packed[:, 0:2]                         # (B, 2)
    logprobs = packed[:, 2]                        # (B,)
    sampled = packed[:, 3].astype(jnp.int32)       # (B,) values in {0, 1}
    return probs, sampled, logprobs


def init_params(key, input_size, hidden_size, output_size=2):
    """Deterministic init matching nn.Linear shapes (w2 kept torch (out, in))."""
    k1, k2, k3, k4 = jax.random.split(key, 4)
    lim1 = 1.0 / jnp.sqrt(input_size)
    lim2 = 1.0 / jnp.sqrt(hidden_size)
    w1 = jax.random.uniform(k1, (input_size, hidden_size), jnp.float32, -lim1, lim1)
    b1 = jax.random.uniform(k2, (1, hidden_size), jnp.float32, -lim1, lim1)
    w2 = jax.random.uniform(k3, (output_size, hidden_size), jnp.float32, -lim2, lim2)
    b2 = jax.random.uniform(k4, (1, output_size), jnp.float32, -lim2, lim2)
    return w1, b1, w2, b2


if __name__ == "__main__":
    # Small shapes consistent with the module: batch=8, input_size=16, hidden=32.
    B, INPUT_SIZE, HIDDEN_SIZE = 8, 16, 32

    root = jax.random.PRNGKey(0)
    k_params, k_input, k_sample = jax.random.split(root, 3)

    params = init_params(k_params, INPUT_SIZE, HIDDEN_SIZE)
    truth = jax.random.normal(k_input, (B, INPUT_SIZE), dtype=jnp.float32)

    probs, sampled, logprobs = net_forward(truth, params, k_sample, training=True)
    jax.block_until_ready((probs, sampled, logprobs))

    # Pure-JAX reference for the deterministic part of the forward.
    w1, b1, w2, b2 = params
    h_ref = jnp.maximum(truth @ w1 + b1, 0.0)
    logits_ref = h_ref @ w2.T + b2
    logp_ref = jax.nn.log_softmax(logits_ref, axis=1)
    probs_ref = jnp.exp(logp_ref)

    assert probs.shape == (B, 2)
    assert sampled.shape == (B,)
    assert logprobs.shape == (B,)
    assert bool(jnp.all((sampled == 0) | (sampled == 1)))
    # p0 = 1 - p1 in-kernel -> rows sum to 1 (up to f32 rounding)
    assert jnp.allclose(jnp.sum(probs, axis=1), 1.0, atol=1e-6)
    # matmul at default MXU precision (bf16 passes) -> loose but meaningful tol
    assert jnp.allclose(probs, probs_ref, atol=1e-2)
    lp_expected = jnp.take_along_axis(logp_ref, sampled[:, None], axis=1)[:, 0]
    assert jnp.allclose(logprobs, lp_expected, atol=1e-2)

    # Eval mode: no RNG consumed; sampled must match argmax on clear-margin rows.
    probs_e, sampled_e, logprobs_e = net_forward(truth, params, k_sample,
                                                 training=False)
    jax.block_until_ready((probs_e, sampled_e, logprobs_e))
    ref_arg = jnp.argmax(logits_ref, axis=1).astype(jnp.int32)
    clear = jnp.abs(logits_ref[:, 1] - logits_ref[:, 0]) > 0.05
    assert bool(jnp.all(jnp.where(clear, sampled_e == ref_arg, True)))
    assert jnp.allclose(probs_e, probs_ref, atol=1e-2)

    print("KERNEL_OK")
</pallas_src>

<mosaic_0001>
module attributes {stable_mosaic.version = 11 : i64} {
  func.func @kernel(%arg0: memref<8x17xf32, #tpu.memory_space<vmem>>, %arg1: memref<19x32xf32, #tpu.memory_space<vmem>>, %arg2: memref<8x4xf32, #tpu.memory_space<vmem>>) attributes {dimension_semantics = [], scalar_prefetch = 0 : i64, scratch_operands = 0 : i64, tpu.core_type = #tpu.core_type<tc>} {
    %c0 = arith.constant 0 : index
    %c0_0 = arith.constant 0 : index
    %0 = vector.load %arg1[%c0, %c0_0] : memref<19x32xf32, #tpu.memory_space<vmem>>, vector<16x32xf32>
    %c16 = arith.constant 16 : index
    %c0_1 = arith.constant 0 : index
    %1 = vector.load %arg1[%c16, %c0_1] : memref<19x32xf32, #tpu.memory_space<vmem>>, vector<1x32xf32>
    %c17 = arith.constant 17 : index
    %c0_2 = arith.constant 0 : index
    %2 = vector.load %arg1[%c17, %c0_2] : memref<19x32xf32, #tpu.memory_space<vmem>>, vector<1x32xf32>
    %c18 = arith.constant 18 : index
    %c0_3 = arith.constant 0 : index
    %3 = vector.load %arg1[%c18, %c0_3] : memref<19x32xf32, #tpu.memory_space<vmem>>, vector<1x1xf32>
    %c0_4 = arith.constant 0 : index
    %c0_5 = arith.constant 0 : index
    %4 = vector.load %arg0[%c0_4, %c0_5] : memref<8x17xf32, #tpu.memory_space<vmem>>, vector<8x16xf32>
    %cst = arith.constant dense<0.000000e+00> : vector<8x32xf32>
    %5 = tpu.matmul %4, %0, %cst {dimension_numbers = #tpu.dot_dimension_numbers<[1], [0], [0], [1], [0, 0, 1, 1], [], []>} : vector<8x16xf32>, vector<16x32xf32>, vector<8x32xf32> -> vector<8x32xf32>
    %6 = vector.broadcast %1 : vector<1x32xf32> to vector<8x32xf32>
    %7 = arith.addf %5, %6 : vector<8x32xf32>
    %cst_6 = arith.constant 0.000000e+00 : f32
    %8 = vector.broadcast %cst_6 : f32 to vector<8x32xf32>
    %9 = arith.maximumf %7, %8 : vector<8x32xf32>
    %10 = vector.broadcast %2 : vector<1x32xf32> to vector<8x32xf32>
    %11 = arith.mulf %9, %10 : vector<8x32xf32>
    %cst_7 = arith.constant dense<0.000000e+00> : vector<8xf32>
    %12 = vector.multi_reduction <add>, %11, %cst_7 [1] : vector<8x32xf32> to vector<8xf32>
    %13 = vector.shape_cast %12 : vector<8xf32> to vector<8x1xf32>
    %14 = vector.broadcast %3 : vector<1x1xf32> to vector<8x1xf32>
    %15 = arith.addf %13, %14 : vector<8x1xf32>
    %16 = math.absf %15 : vector<8x1xf32>
    %cst_8 = arith.constant 0.000000e+00 : f32
    %17 = vector.broadcast %cst_8 : f32 to vector<8x1xf32>
    %18 = arith.subf %17, %16 : vector<8x1xf32>
    %19 = math.exp %18 : vector<8x1xf32>
    %20 = math.log1p %19 : vector<8x1xf32>
    %cst_9 = arith.constant 0.000000e+00 : f32
    %21 = vector.broadcast %cst_9 : f32 to vector<8x1xf32>
    %22 = arith.subf %21, %15 : vector<8x1xf32>
    %cst_10 = arith.constant 0.000000e+00 : f32
    %23 = vector.broadcast %cst_10 : f32 to vector<8x1xf32>
    %24 = arith.maximumf %22, %23 : vector<8x1xf32>
    %25 = arith.addf %24, %20 : vector<8x1xf32>
    %cst_11 = arith.constant 0.000000e+00 : f32
    %26 = vector.broadcast %cst_11 : f32 to vector<8x1xf32>
    %27 = arith.subf %26, %25 : vector<8x1xf32>
    %cst_12 = arith.constant 0.000000e+00 : f32
    %28 = vector.broadcast %cst_12 : f32 to vector<8x1xf32>
    %29 = arith.maximumf %15, %28 : vector<8x1xf32>
    %30 = arith.addf %29, %20 : vector<8x1xf32>
    %cst_13 = arith.constant 0.000000e+00 : f32
    %31 = vector.broadcast %cst_13 : f32 to vector<8x1xf32>
    %32 = arith.subf %31, %30 : vector<8x1xf32>
    %cst_14 = arith.constant 1.000000e+00 : f32
    %33 = vector.broadcast %cst_14 : f32 to vector<8x1xf32>
    %34 = arith.addf %33, %19 : vector<8x1xf32>
    %cst_15 = arith.constant 1.000000e+00 : f32
    %35 = vector.broadcast %cst_15 : f32 to vector<8x1xf32>
    %36 = arith.divf %35, %34 : vector<8x1xf32>
    %cst_16 = arith.constant 0.000000e+00 : f32
    %37 = vector.broadcast %cst_16 : f32 to vector<8x1xf32>
    %38 = arith.cmpf oge, %15, %37 : vector<8x1xf32>
    %39 = arith.mulf %19, %36 : vector<8x1xf32>
    %40 = arith.select %38, %36, %39 : vector<8x1xi1>, vector<8x1xf32>
    %cst_17 = arith.constant 1.000000e+00 : f32
    %41 = vector.broadcast %cst_17 : f32 to vector<8x1xf32>
    %42 = arith.subf %41, %40 : vector<8x1xf32>
    %c0_18 = arith.constant 0 : index
    %c16_19 = arith.constant 16 : index
    %43 = vector.load %arg0[%c0_18, %c16_19] : memref<8x17xf32, #tpu.memory_space<vmem>>, vector<8x1xf32>
    %44 = arith.cmpf oge, %43, %42 : vector<8x1xf32>
    %45 = arith.extui %44 : vector<8x1xi1> to vector<8x1xi32>
    %46 = arith.sitofp %45 : vector<8x1xi32> to vector<8x1xf32>
    %cst_20 = arith.constant 5.000000e-01 : f32
    %47 = vector.broadcast %cst_20 : f32 to vector<8x1xf32>
    %48 = arith.cmpf ogt, %46, %47 : vector<8x1xf32>
    %49 = arith.select %48, %27, %32 : vector<8x1xi1>, vector<8x1xf32>
    %50 = tpu.concatenate %42, %40, %49, %46 in 1 : vector<8x1xf32>, vector<8x1xf32>, vector<8x1xf32>, vector<8x1xf32> -> vector<8x4xf32>
    %c0_21 = arith.constant 0 : index
    %c0_22 = arith.constant 0 : index
    %51 = vector.load %arg2[%c0_21, %c0_22] : memref<8x4xf32, #tpu.memory_space<vmem>>, vector<8x4xf32>
    tpu.vector_store %arg2[%c0_21, %c0_22], %50 {strides = array<i32>} : memref<8x4xf32, #tpu.memory_space<vmem>>, vector<8x4xf32>,
    return
  }
}

</mosaic_0001>

<bundles_post_ra>
// kernel: net_forward.1
= control target key start
LH: loop header
LB: loop body
LE: loop exit
PB: predicated region body
PF: predicated region fallthrough
CT: control target
= control target key end

     0   :  { %v209_v0 = vmov 0.0|0.0   ;;  %vm210_vm0 = vmmov 0   ;;  %v211_v3 = vmov 0.0   ;;  %vm21_vm1 = vcmask 130048   ;;  %s213_s20 = smov 1   ;;  %s214_s21 = smov 114   ;;  %s252_s1 = inlined_call_operand.vmem [shape: f32[19,32], index: 1, kind: input, shape index: {}]   ;;  %s253_s0 = inlined_call_operand.vmem [shape: f32[8,17], index: 0, kind: input, shape index: {}]   ;;  %s254_s2 = inlined_call_operand.vmem [shape: f32[8,4], index: 2, kind: output, shape index: {}]  }
   0x1   :  { %193 = vmatprep.subr.bf16.mxu0 %v209_v0  ;;  %v11_v1 = vld [vmem:[%s252_s1] sm:$0xff]  ;;  %v12_v2 = vld [vmem:[%s252_s1 + $0x8] sm:$0xff]  ;;  %190 = vmatprep.mubr.msk.f32.mxu0 %vm210_vm0, %v211_v3  ;;  %v178_v6 = vld [vmem:[%s252_s1 + $0x10] ss:$0 sm:$0xff]  ;;  %vm101_vm2 = vcmask 261120   ;;  %s215_s22 = smov 115  }
   0x2   :  { %v194_v4 = vpack.c.bf16 %v12_v2, %v11_v1  ;;  %v16_v5 = vld [vmem:[%s253_s0] sm:$0xff]  ;;  %v180_v10 = vld [vmem:[%s252_s1 + $0x11] ss:$0 sm:$0xff]  ;;  %v181_v14 = vld [vmem:[%s252_s1 + $0x12] ss:$0 sm:$0xff]  ;;  %s212_s1 = smov 16  }
   0x3   :  { %vm166_vm7 = vcmask 7168   ;;  %vm168_vm8 = vcmask 15360   ;;  %vm170_vm9 = vcmask 23552   ;;  %vm172_vm10 = vcmask 31744  }
   0x4   :  { %195 = vmatpush3.bf16.msra.mxu0 %v194_v4 }
   0x7   :  { %191 = vmatmul.mubr.msk.f32.vlgmr.msra.gmra.mrb[0].mxu0 %vm21_vm1, %v16_v5 }
  0xda   :  { %v91_v7 = vpop.f32.mrb[0].mxu0 }
  0xdb   :  { %v92_v8 = vadd.f32 %v178_v6, %v91_v7  ;;  %v192_v9 = vpop.f32.mrb[1].mxu0 }
  0xdd   :  { %v95_v11 = vmax.f32 %v92_v8, 0.0 }
  0xdf   :  { %v100_v12 = vmul.f32 %v180_v10, %v95_v11 }
  0xe1   :  { %v102_v13 = vsel %vm101_vm2, %v100_v12, 0.0 }
  0xe2   :  { %103 = vadd.xlane.f32.xlu0 %v102_v13 }
 0x16f   :  { %v104_v15 = vpop.xlane.xlu0 %103 }
 0x170   :  { %v109_v16 = vadd.f32 %v181_v14, %v104_v15 }
 0x172   :  { %v110_v17 = vand.u32 2147483647, %v109_v16  ;;  %v123_v25 = vsub.f32 0.0, %v109_v16  ;;  %vm133_vm3 = vcmp.ge.f32.partialorder %v109_v16, 0.0  ;;  %v127_v36 = vmax.f32 %v109_v16, 0.0 }
 0x174   :  { %v111_v18 = vsub.f32 0.0, %v110_v17  ;;  %v124_v32 = vmax.f32 %v123_v25, 0.0 }
 0x176   :  { %v112_v19 = vmul.f32 1.442695, %v111_v18 }
 0x178   :  { %203 = vpow2.f32 %v112_v19 }
 0x182   :  { %v204_v20 = vpop.eup %203 }
 0x183   :  { %v114_v21 = vadd.f32 1.0, %v204_v20  ;;  %v117_v22 = vmul.f32 -0.5, %v204_v20  ;;  %v120_v24 = vand.u32 2147483647, %v204_v20 }
 0x185   :  { %205 = vrcp.f32 %v114_v21  ;;  %v118_v23 = vadd.f32 1.0, %v117_v22  ;;  %vm121_vm4 = vcmp.lt.f32.partialorder %v120_v24, 0.0004427343 }
 0x186   :  { %207 = vlog2.f32 %v114_v21 }
 0x187   :  { %v119_v30 = vmul.f32 %v204_v20, %v118_v23 }
 0x18f   :  { %v206_v26 = vpop.eup %205 }
 0x190   :  { %v208_v27 = vpop.eup %207  ;;  %v134_v28 = vmul.f32 %v206_v26, %v204_v20 }
 0x191   :  { %v116_v29 = vmul.f32 0.6931472, %v208_v27 }
 0x192   :  { %v135_v31 = vsel %vm133_vm3, %v206_v26, %v134_v28 }
 0x193   :  { %v136_v33 = vsub.f32 1.0, %v135_v31  ;;  %v122_v34 = vsel %vm121_vm4, %v119_v30, %v116_v29 }
 0x194   :  { %v125_v35 = vadd.f32 %v124_v32, %v122_v34  ;;  %v128_v38 = vadd.f32 %v127_v36, %v122_v34 }
 0x195   :  { %138 = vrot.lane.b32.xlu0 %v136_v33, %s212_s1 }
 0x196   :  { %v126_v37 = vsub.f32 0.0, %v125_v35  ;;  %v129_v39 = vsub.f32 0.0, %v128_v38 }
 0x198   :  { %146 = vrot.lane.b32.xlu1 %v126_v37, %s212_s1 }
 0x19c   :  { %150 = vrot.lane.b32.xlu1 %v129_v39, %s212_s1 }
 0x1a0   :  { %155 = vrot.lane.b32.xlu1 %v135_v31, %s213_s20 }
 0x207   :  { %v139_v40 = vpop.permute.xlu0 %138 }
 0x208   :  { %vm141_vm5 = vcmp.ge.f32.partialorder %v16_v5, %v139_v40 }
 0x209   :  { %v182_v42 = vsel %vm141_vm5, 1.0, %v211_v3 }
 0x20a   :  { %v147_v41 = vpop.permute.xlu1 %146  ;;  %vm144_vm6 = vcmp.gt.f32.partialorder %v182_v42, 0.5 }
 0x20e   :  { %v151_v43 = vpop.permute.xlu1 %150 }
 0x20f   :  { %v153_v44 = vsel %vm144_vm6, %v147_v41, %v151_v43 }
 0x210   :  { %159 = vrot.lane.b32.xlu1 %v153_v44, %s214_s21 }
 0x212   :  { %v156_v45 = vpop.permute.xlu1 %155 }
 0x213   :  { %v167_v47 = vsel %vm166_vm7, %v136_v33, %v156_v45 }
 0x214   :  { %163 = vrot.lane.b32.xlu1 %v182_v42, %s215_s22 }
 0x282   :  { %v160_v46 = vpop.permute.xlu1 %159 }
 0x283   :  { %v169_v48 = vsel %vm168_vm8, %v167_v47, %v160_v46 }
 0x286   :  { %v164_v49 = vpop.permute.xlu1 %163 }
 0x287   :  { %v171_v50 = vsel %vm170_vm9, %v169_v48, %v164_v49 }
 0x288   :  { %173 = vst.msk [vmem:[%s254_s2] sm:$0xff] %vm172_vm10, %v171_v50 }

</bundles_post_ra>
